<compile_context>
chip_gen: v5e
topology: v5e:2x2
jax: 0.10.0
libtpu: 0.0.40
codegen_flags: <defaults>
</compile_context>

<pallas_src>
import functools

import jax
import jax.numpy as jnp
from jax.experimental import pallas as pl
from jax.experimental.pallas import tpu as pltpu

_DEFAULT_SCOPED_VMEM = 32 * 1024 * 1024  # scoped VMEM default on v6e/v7x


def _dqn_kernel(x_ref, w1_ref, b1_ref, w2_ref, b2_ref, o_ref):
    # Cast x to bf16 in-kernel (no wrapper-side cast/copy through HBM).
    x = x_ref[...].astype(jnp.bfloat16)
    # fc1: bf16 operands on the MXU, f32 accumulation.
    h = jnp.dot(x, w1_ref[...], preferred_element_type=jnp.float32)
    # bias add + ReLU in f32 on the VPU (no bf16 VPU on v5e).
    h = jnp.maximum(h + b1_ref[...], 0.0)
    # fc2: cast activation back to bf16 for the second MXU pass.
    out = jnp.dot(h.astype(jnp.bfloat16), w2_ref[...],
                  preferred_element_type=jnp.float32)
    o_ref[...] = (out + b2_ref[...]).astype(o_ref.dtype)


def prepare_params(w1, b1, w2, b2):
    """One-time (init / param-update) prep: cast weights to bf16, biases to
    f32 row vectors.  Keeps the per-call wrapper free of pad/cast XLA ops."""
    w1_p = w1.astype(jnp.bfloat16)                   # (I, H)
    w2_p = w2.astype(jnp.bfloat16)                   # (H, O)
    b1_p = b1.astype(jnp.float32).reshape(1, -1)     # (1, H)
    b2_p = b2.astype(jnp.float32).reshape(1, -1)     # (1, O)
    return w1_p, b1_p, w2_p, b2_p


@functools.partial(jax.jit, static_argnames=("block_batch",))
def deep_q_network(x, w1_bf16, b1_row, w2_bf16, b2_row, *, block_batch=None):
    """Forward pass of DeepQNetwork.

    x       : (B, I) float32 (unpadded)
    w1_bf16 : (I, H) bfloat16   (transposed vs torch's (H, I))
    b1_row  : (1, H) float32
    w2_bf16 : (H, O) bfloat16   (transposed vs torch's (O, H))
    b2_row  : (1, O) float32
    returns : (B, O) float32
    """
    B, I = x.shape
    H = w1_bf16.shape[1]
    O = w2_bf16.shape[1]

    # Batch tile selection:
    #  * small/medium batch -> one full-array tile (no padding; full-dim
    #    blocks are always legal regardless of the (8,128) rule).
    #  * large batch        -> TB=512: big enough to amortize the ~0.35 us
    #    per-grid-step overhead and hit the HBM roofline, small enough to
    #    keep >=2 grid steps (v7x megacore) once B >= 1024.
    if block_batch is None:
        TB = B if B <= 512 else 512
    else:
        TB = block_batch

    grid = (pl.cdiv(B, TB),)

    # VMEM budget check (resident weights/biases + double-buffered x/out
    # tiles).  Only raise the scoped limit if the default would not fit.
    resident = 2 * (I * H + H * O) + 4 * (H + O)                 # bf16 w, f32 b
    streamed = 2 * (TB * I * 4 + TB * O * 4)                     # double-buffered
    vmem_est = resident + streamed + (2 << 20)                   # + slack
    vmem_limit = vmem_est if vmem_est > _DEFAULT_SCOPED_VMEM else None

    out = pl.pallas_call(
        _dqn_kernel,
        out_shape=jax.ShapeDtypeStruct((B, O), jnp.float32),
        grid_spec=pltpu.PrefetchScalarGridSpec(
            num_scalar_prefetch=0,
            grid=grid,
            in_specs=[
                # x: tiled along batch, pipelined against compute.
                pl.BlockSpec((TB, I), lambda i: (i, 0)),
                # weights / biases: constant block index -> resident in VMEM.
                pl.BlockSpec((I, H), lambda i: (0, 0)),
                pl.BlockSpec((1, H), lambda i: (0, 0)),
                pl.BlockSpec((H, O), lambda i: (0, 0)),
                pl.BlockSpec((1, O), lambda i: (0, 0)),
            ],
            out_specs=pl.BlockSpec((TB, O), lambda i: (i, 0)),
        ),
        compiler_params=pltpu.CompilerParams(
            # Batch tiles are independent: megacore-shard on v7x's 2 TCs.
            dimension_semantics=("parallel",),
            vmem_limit_bytes=vmem_limit,
        ),
    )(x, w1_bf16, b1_row, w2_bf16, b2_row)

    return out


def init_params(key, input_size, hidden_size, output_size):
    """Deterministic init mimicking nn.Linear's uniform(-1/sqrt(fan_in), +)."""
    k1, k2, k3, k4 = jax.random.split(key, 4)
    bound1 = 1.0 / jnp.sqrt(input_size)
    bound2 = 1.0 / jnp.sqrt(hidden_size)
    # stored as (in, out) — transposed relative to torch's (out, in)
    w1 = jax.random.uniform(k1, (input_size, hidden_size), jnp.float32, -bound1, bound1)
    b1 = jax.random.uniform(k2, (hidden_size,), jnp.float32, -bound1, bound1)
    w2 = jax.random.uniform(k3, (hidden_size, output_size), jnp.float32, -bound2, bound2)
    b2 = jax.random.uniform(k4, (output_size,), jnp.float32, -bound2, bound2)
    return w1, b1, w2, b2


if __name__ == "__main__":
    input_size, hidden_size, output_size = 16, 32, 4
    batch = 8

    key = jax.random.PRNGKey(0)
    kx, kp = jax.random.split(key)
    x = jax.random.normal(kx, (batch, input_size), jnp.float32)
    w1, b1, w2, b2 = init_params(kp, input_size, hidden_size, output_size)

    # One-time param prep (done at init / param-update time, not per call).
    w1_p, b1_p, w2_p, b2_p = prepare_params(w1, b1, w2, b2)

    out = deep_q_network(x, w1_p, b1_p, w2_p, b2_p)
    out = jax.block_until_ready(out)
    assert out.shape == (batch, output_size)

    # Reference 1: mirror the kernel's bf16-operand / f32-accumulate math.
    h_ref = jnp.maximum(
        jnp.dot(x.astype(jnp.bfloat16), w1.astype(jnp.bfloat16),
                preferred_element_type=jnp.float32) + b1, 0.0)
    ref_bf16 = jnp.dot(h_ref.astype(jnp.bfloat16), w2.astype(jnp.bfloat16),
                       preferred_element_type=jnp.float32) + b2
    assert jnp.allclose(out, ref_bf16, atol=1e-4, rtol=1e-4)

    # Reference 2: full-f32 math, tolerance relaxed to bf16 operand precision.
    ref_f32 = jnp.maximum(x @ w1 + b1, 0.0) @ w2 + b2
    assert jnp.allclose(out, ref_f32, atol=3e-2, rtol=3e-2)

    # Also exercise a larger, multi-tile batch (partial last block via cdiv).
    big_B = 1100
    xb = jax.random.normal(kx, (big_B, input_size), jnp.float32)
    out_b = jax.block_until_ready(deep_q_network(xb, w1_p, b1_p, w2_p, b2_p))
    ref_b = jnp.maximum(xb @ w1 + b1, 0.0) @ w2 + b2
    assert out_b.shape == (big_B, output_size)
    assert jnp.allclose(out_b, ref_b, atol=3e-2, rtol=3e-2)

    print("KERNEL_OK")
</pallas_src>

<mosaic_0001>
module attributes {stable_mosaic.version = 11 : i64} {
  func.func @_dqn_kernel(%arg0: i32, %arg1: memref<8x16xf32, #tpu.memory_space<vmem>>, %arg2: memref<16x32xbf16, #tpu.memory_space<vmem>>, %arg3: memref<1x32xf32, #tpu.memory_space<vmem>>, %arg4: memref<32x4xbf16, #tpu.memory_space<vmem>>, %arg5: memref<1x4xf32, #tpu.memory_space<vmem>>, %arg6: memref<8x4xf32, #tpu.memory_space<vmem>>) attributes {dimension_semantics = [#tpu.dimension_semantics<parallel>], iteration_bounds = array<i64: 1>, scalar_prefetch = 0 : i64, scratch_operands = 0 : i64, tpu.core_type = #tpu.core_type<tc>, window_params = [{transform_indices = @transform_0, window_bounds = array<i64: 8, 16>}, {pipeline_mode = #tpu.pipeline_mode<synchronous>, transform_indices = @transform_1, window_bounds = array<i64: 16, 32>}, {pipeline_mode = #tpu.pipeline_mode<synchronous>, transform_indices = @transform_2, window_bounds = array<i64: 1, 32>}, {pipeline_mode = #tpu.pipeline_mode<synchronous>, transform_indices = @transform_3, window_bounds = array<i64: 32, 4>}, {pipeline_mode = #tpu.pipeline_mode<synchronous>, transform_indices = @transform_4, window_bounds = array<i64: 1, 4>}, {transform_indices = @transform_5, window_bounds = array<i64: 8, 4>}]} {
    %c0 = arith.constant 0 : index
    %c0_0 = arith.constant 0 : index
    %0 = vector.load %arg1[%c0, %c0_0] : memref<8x16xf32, #tpu.memory_space<vmem>>, vector<8x16xf32>
    %1 = arith.truncf %0 : vector<8x16xf32> to vector<8x16xbf16>
    %c0_1 = arith.constant 0 : index
    %c0_2 = arith.constant 0 : index
    %2 = vector.load %arg2[%c0_1, %c0_2] : memref<16x32xbf16, #tpu.memory_space<vmem>>, vector<16x32xbf16>
    %cst = arith.constant dense<0.000000e+00> : vector<8x32xf32>
    %3 = tpu.matmul %1, %2, %cst {dimension_numbers = #tpu.dot_dimension_numbers<[1], [0], [0], [1], [0, 0, 1, 1], [], []>} : vector<8x16xbf16>, vector<16x32xbf16>, vector<8x32xf32> -> vector<8x32xf32>
    %c0_3 = arith.constant 0 : index
    %c0_4 = arith.constant 0 : index
    %4 = vector.load %arg3[%c0_3, %c0_4] : memref<1x32xf32, #tpu.memory_space<vmem>>, vector<1x32xf32>
    %5 = vector.broadcast %4 : vector<1x32xf32> to vector<8x32xf32>
    %6 = arith.addf %3, %5 : vector<8x32xf32>
    %cst_5 = arith.constant 0.000000e+00 : f32
    %7 = vector.broadcast %cst_5 : f32 to vector<8x32xf32>
    %8 = arith.maximumf %6, %7 : vector<8x32xf32>
    %9 = arith.truncf %8 : vector<8x32xf32> to vector<8x32xbf16>
    %c0_6 = arith.constant 0 : index
    %c0_7 = arith.constant 0 : index
    %10 = vector.load %arg4[%c0_6, %c0_7] : memref<32x4xbf16, #tpu.memory_space<vmem>>, vector<32x4xbf16>
    %cst_8 = arith.constant dense<0.000000e+00> : vector<8x4xf32>
    %11 = tpu.matmul %9, %10, %cst_8 {dimension_numbers = #tpu.dot_dimension_numbers<[1], [0], [0], [1], [0, 0, 1, 1], [], []>} : vector<8x32xbf16>, vector<32x4xbf16>, vector<8x4xf32> -> vector<8x4xf32>
    %c0_9 = arith.constant 0 : index
    %c0_10 = arith.constant 0 : index
    %12 = vector.load %arg5[%c0_9, %c0_10] : memref<1x4xf32, #tpu.memory_space<vmem>>, vector<1x4xf32>
    %13 = vector.broadcast %12 : vector<1x4xf32> to vector<8x4xf32>
    %14 = arith.addf %11, %13 : vector<8x4xf32>
    %c0_11 = arith.constant 0 : index
    %c0_12 = arith.constant 0 : index
    %15 = vector.load %arg6[%c0_11, %c0_12] : memref<8x4xf32, #tpu.memory_space<vmem>>, vector<8x4xf32>
    tpu.vector_store %arg6[%c0_11, %c0_12], %14 {strides = array<i32>} : memref<8x4xf32, #tpu.memory_space<vmem>>, vector<8x4xf32>,
    return
  }
  func.func @transform_0(%arg0: i32) -> (i32, i32) {
    %c0_i32 = arith.constant 0 : i32
    %c0_i32_0 = arith.constant 0 : i32
    return %arg0, %c0_i32 : i32, i32
  }
  func.func @transform_1(%arg0: i32) -> (i32, i32) {
    %c0_i32 = arith.constant 0 : i32
    %c0_i32_0 = arith.constant 0 : i32
    %c0_i32_1 = arith.constant 0 : i32
    return %c0_i32, %c0_i32_0 : i32, i32
  }
  func.func @transform_2(%arg0: i32) -> (i32, i32) {
    %c0_i32 = arith.constant 0 : i32
    %c0_i32_0 = arith.constant 0 : i32
    %c0_i32_1 = arith.constant 0 : i32
    return %c0_i32, %c0_i32_0 : i32, i32
  }
  func.func @transform_3(%arg0: i32) -> (i32, i32) {
    %c0_i32 = arith.constant 0 : i32
    %c0_i32_0 = arith.constant 0 : i32
    %c0_i32_1 = arith.constant 0 : i32
    return %c0_i32, %c0_i32_0 : i32, i32
  }
  func.func @transform_4(%arg0: i32) -> (i32, i32) {
    %c0_i32 = arith.constant 0 : i32
    %c0_i32_0 = arith.constant 0 : i32
    %c0_i32_1 = arith.constant 0 : i32
    return %c0_i32, %c0_i32_0 : i32, i32
  }
  func.func @transform_5(%arg0: i32) -> (i32, i32) {
    %c0_i32 = arith.constant 0 : i32
    %c0_i32_0 = arith.constant 0 : i32
    return %arg0, %c0_i32 : i32, i32
  }
}

</mosaic_0001>

<bundles_post_ra>
// kernel: deep_q_network.1
= control target key start
LH: loop header
LB: loop body
LE: loop exit
PB: predicated region body
PF: predicated region fallthrough
CT: control target
= control target key end

     0   :  { %vm35_vm0 = vcmask 130048   ;;  %vm74_vm1 = vcmask 261120   ;;  %vm91_vm2 = vcmask 31744   ;;  %s167_s1 = inlined_call_operand.vmem [shape: bf16[16,32], index: 1, kind: input, shape index: {}]   ;;  %s168_s0 = inlined_call_operand.vmem [shape: f32[8,16], index: 0, kind: input, shape index: {}]   ;;  %s169_s2 = inlined_call_operand.vmem [shape: f32[1,32], index: 2, kind: input, shape index: {}]   ;;  %s170_s4 = inlined_call_operand.vmem [shape: f32[1,4], index: 4, kind: input, shape index: {}]   ;;  %s171_s3 = inlined_call_operand.vmem [shape: bf16[32,4], index: 3, kind: input, shape index: {}]   ;;  %s172_s5 = inlined_call_operand.vmem [shape: f32[8,4], index: 5, kind: output, shape index: {}]  }
   0x1   :  { %v111_v0 = vld [vmem:[%s167_s1] sm:$0xff]  ;;  %v113_v3 = vld [vmem:[%s171_s3 + $0x8] sm:$0xff] }
   0x2   :  { %v21_v1 = vld [vmem:[%s168_s0] sm:$0xff]  ;;  %46 = vmatpush.bf16.msra.mxu0 %v111_v0  ;;  %84 = vmatpush.bf16.msra.mxu1 %v113_v3 }
   0x3   :  { %v22_v2 = vpack.c.bf16 %v21_v1, %v21_v1  ;;  %v112_v4 = vld [vmem:[%s171_s3] sm:$0xff] }
   0x4   :  { %v114_v5 = vld [vmem:[%s169_s2] ss:$0 sm:$0xff] }
   0x5   :  { %101 = vmatmul.msk.bf16.vlgmr.msra.gmra.mxu0 %vm35_vm0, %v22_v2  ;;  %v115_v11 = vld [vmem:[%s170_s4] ss:$0 sm:$0xff] }
   0x6   :  { %85 = vmatpush.bf16.msra.mxu1 %v112_v4 }
  0x82   :  { %v48_v6 = vpop.f32.mrf.mxu0 }
  0x83   :  { %v49_v7 = vadd.f32 %v114_v5, %v48_v6 }
  0x85   :  { %v52_v8 = vmax.f32 %v49_v7, 0.0 }
  0x87   :  { %v53_v9 = vpack.c.bf16 %v52_v8, %v52_v8 }
  0x89   :  { %110 = vmatmul.msk.bf16.vlgmr.msra.gmra.mxu1 %vm74_vm1, %v53_v9 }
  0x8a   :  { %v50_v10 = vpop.f32.mrf.mxu0 }
 0x106   :  { %v87_v12 = vpop.f32.mrf.mxu1 }
 0x107   :  { %v88_v13 = vadd.f32 %v115_v11, %v87_v12 }
 0x109   :  { %92 = vst.msk [vmem:[%s172_s5] sm:$0xff] %vm91_vm2, %v88_v13 }
 0x10e   :  { %v89_v14 = vpop.f32.mrf.mxu1 }

</bundles_post_ra>
